<compile_context>
chip_gen: v7x
topology: tpu7x:2x2x1
jax: 0.10.0
libtpu: 0.0.40
codegen_flags: <defaults>
</compile_context>

<pallas_src>
import jax
import jax.numpy as jnp
from jax.experimental import pallas as pl
from jax.experimental.pallas import tpu as pltpu


def _norm_reg_l1_kernel(pred_ref, tgt_ref, mask_ref, out_ref):
    """Grid = (B,), one batch per step (parallel across TensorCores).

    pred_ref : (1, C, K) f32  -- gathered features, channels x items (K lane-dense)
    tgt_ref  : (1, C, K) f32  -- regression targets, same orientation
    mask_ref : (1, 1, K) f32  -- item mask, broadcast over C (sublanes)
    out_ref  : (1, 1, 1) f32  -- per-batch partial numerator sum
    """
    pred = pred_ref[0]                                 # (C, K)
    tgt = tgt_ref[0]                                   # (C, K)
    m = mask_ref[0]                                    # (1, K) -> broadcasts over C

    # pred / (target + 1e-4) via EUP reciprocal (keeps VALU slots free).
    inv = pl.reciprocal(tgt + jnp.float32(1e-4), approx=False)
    # torch replaces target by ones, so the L1 term is |pred*m - m|.
    diff = jnp.abs(pred * inv * m - m)                 # (C, K), one VPU pass

    s = jnp.sum(diff, axis=1, keepdims=True)           # (C, 1) lane reduce (XLU)
    s = jnp.sum(s, axis=0, keepdims=True)              # (1, 1) sublane reduce
    out_ref[0] = s                                     # per-batch partial


def norm_reg_l1_loss(output, mask, ind, target):
    """output: (B, C, H, W) f32, mask: (B, K), ind: (B, K) int, target: (B, K, C) f32."""
    B, C, H, W = output.shape
    K = ind.shape[1]
    HW = H * W

    # Free view of NCHW (no transposed copy of the full feature map in HBM).
    feat = output.reshape(B, C, HW).astype(jnp.float32)
    mask_f = mask.astype(jnp.float32)
    target_f = target.astype(jnp.float32)

    # Gather only the K needed spatial positions along the lane-contiguous axis.
    # TODO(synk): a per-item channel-strided (C,1) DMA gather from the NCHW map has
    # no clean/efficient Pallas-DMA form, so the gather is delegated to XLA here;
    # only the B*K*C gathered elements reach the kernel.
    idx = jnp.clip(ind.astype(jnp.int32), 0, HW - 1)                     # bounds-safe
    pred_t = jnp.take_along_axis(
        feat, jnp.broadcast_to(idx[:, None, :], (B, C, K)), axis=2)      # (B, C, K)
    tgt_t = jnp.transpose(target_f, (0, 2, 1))                           # (B, C, K), small
    mask_r = mask_f.reshape(B, 1, K)                                     # (B, 1, K)

    grid_spec = pltpu.PrefetchScalarGridSpec(
        num_scalar_prefetch=0,
        grid=(B,),
        in_specs=[
            pl.BlockSpec((1, C, K), lambda b: (b, 0, 0)),   # pred (gathered)
            pl.BlockSpec((1, C, K), lambda b: (b, 0, 0)),   # target
            pl.BlockSpec((1, 1, K), lambda b: (b, 0, 0)),   # mask
        ],
        out_specs=pl.BlockSpec((1, 1, 1), lambda b: (b, 0, 0)),
    )

    partials = pl.pallas_call(
        _norm_reg_l1_kernel,
        out_shape=jax.ShapeDtypeStruct((B, 1, 1), jnp.float32),
        grid_spec=grid_spec,
        compiler_params=pltpu.CompilerParams(dimension_semantics=("parallel",)),
    )(pred_t, tgt_t, mask_r)

    # torch's mask.sum() is over the C-expanded mask -> sum(mask) * C.
    den = jnp.sum(mask_f) * jnp.float32(C) + jnp.float32(1e-4)
    return jnp.sum(partials) / den


def _reference_loss(output, mask, ind, target):
    B, C, H, W = output.shape
    K = ind.shape[1]
    feat = jnp.transpose(output, (0, 2, 3, 1)).reshape(B, H * W, C)
    idx = jnp.broadcast_to(ind[:, :, None].astype(jnp.int32), (B, K, C))
    pred = jnp.take_along_axis(feat, idx, axis=1)
    m = jnp.broadcast_to(mask.astype(jnp.float32)[:, :, None], pred.shape)
    pred = pred / (target + 1e-4)
    loss = jnp.sum(jnp.abs(pred * m - m))
    return loss / (jnp.sum(m) + 1e-4)


if __name__ == "__main__":
    B, C, H, W, K = 2, 4, 16, 16, 8
    key = jax.random.PRNGKey(0)
    k1, k2, k3, k4 = jax.random.split(key, 4)

    output = jax.random.normal(k1, (B, C, H, W), dtype=jnp.float32)
    target = jax.random.uniform(k2, (B, K, C), dtype=jnp.float32,
                                minval=0.5, maxval=2.0)
    ind = jax.random.randint(k3, (B, K), 0, H * W, dtype=jnp.int32)
    mask = (jax.random.uniform(k4, (B, K)) > 0.3).astype(jnp.float32)

    loss = jax.block_until_ready(norm_reg_l1_loss(output, mask, ind, target))
    ref = jax.block_until_ready(_reference_loss(output, mask, ind, target))

    assert jnp.isfinite(loss), "non-finite loss"
    assert jnp.allclose(loss, ref, rtol=1e-4, atol=1e-5), (loss, ref)
    print("KERNEL_OK")
</pallas_src>

<mosaic_0001>
module attributes {stable_mosaic.version = 11 : i64} {
  func.func @_norm_reg_l1_kernel(%arg0: i32, %arg1: memref<1x4x8xf32, #tpu.memory_space<vmem>>, %arg2: memref<1x4x8xf32, #tpu.memory_space<vmem>>, %arg3: memref<1x1x8xf32, #tpu.memory_space<vmem>>, %arg4: memref<1x1x1xf32, #tpu.memory_space<vmem>>) attributes {dimension_semantics = [#tpu.dimension_semantics<parallel>], iteration_bounds = array<i64: 2>, scalar_prefetch = 0 : i64, scratch_operands = 0 : i64, tpu.core_type = #tpu.core_type<tc>, window_params = [{transform_indices = @transform_0, window_bounds = array<i64: 1, 4, 8>}, {transform_indices = @transform_1, window_bounds = array<i64: 1, 4, 8>}, {transform_indices = @transform_2, window_bounds = array<i64: 1, 1, 8>}, {transform_indices = @transform_3, window_bounds = array<i64: 1, 1, 1>}]} {
    %c0 = arith.constant 0 : index
    %c0_0 = arith.constant 0 : index
    %c0_1 = arith.constant 0 : index
    %0 = vector.load %arg1[%c0, %c0_0, %c0_1] : memref<1x4x8xf32, #tpu.memory_space<vmem>>, vector<1x4x8xf32>
    %1 = vector.shape_cast %0 : vector<1x4x8xf32> to vector<4x8xf32>
    %c0_2 = arith.constant 0 : index
    %c0_3 = arith.constant 0 : index
    %c0_4 = arith.constant 0 : index
    %2 = vector.load %arg2[%c0_2, %c0_3, %c0_4] : memref<1x4x8xf32, #tpu.memory_space<vmem>>, vector<1x4x8xf32>
    %3 = vector.shape_cast %2 : vector<1x4x8xf32> to vector<4x8xf32>
    %c0_5 = arith.constant 0 : index
    %c0_6 = arith.constant 0 : index
    %c0_7 = arith.constant 0 : index
    %4 = vector.load %arg3[%c0_5, %c0_6, %c0_7] : memref<1x1x8xf32, #tpu.memory_space<vmem>>, vector<1x1x8xf32>
    %5 = vector.shape_cast %4 : vector<1x1x8xf32> to vector<1x8xf32>
    %cst = arith.constant 9.99999974E-5 : f32
    %6 = vector.broadcast %cst : f32 to vector<4x8xf32>
    %7 = arith.addf %3, %6 : vector<4x8xf32>
    %8 = tpu.reciprocal %7 : vector<4x8xf32> -> vector<4x8xf32>
    %9 = arith.mulf %1, %8 : vector<4x8xf32>
    %10 = vector.broadcast %5 : vector<1x8xf32> to vector<4x8xf32>
    %11 = arith.mulf %9, %10 : vector<4x8xf32>
    %12 = vector.broadcast %5 : vector<1x8xf32> to vector<4x8xf32>
    %13 = arith.subf %11, %12 : vector<4x8xf32>
    %14 = math.absf %13 : vector<4x8xf32>
    %cst_8 = arith.constant dense<0.000000e+00> : vector<4xf32>
    %15 = vector.multi_reduction <add>, %14, %cst_8 [1] : vector<4x8xf32> to vector<4xf32>
    %16 = vector.shape_cast %15 : vector<4xf32> to vector<4x1xf32>
    %cst_9 = arith.constant dense<0.000000e+00> : vector<1xf32>
    %17 = vector.multi_reduction <add>, %16, %cst_9 [0] : vector<4x1xf32> to vector<1xf32>
    %18 = vector.shape_cast %17 : vector<1xf32> to vector<1x1xf32>
    %c0_10 = arith.constant 0 : index
    %c0_11 = arith.constant 0 : index
    %c0_12 = arith.constant 0 : index
    %19 = vector.load %arg4[%c0_10, %c0_11, %c0_12] : memref<1x1x1xf32, #tpu.memory_space<vmem>>, vector<1x1x1xf32>
    %20 = vector.shape_cast %19 : vector<1x1x1xf32> to vector<1x1xf32>
    %21 = vector.shape_cast %18 : vector<1x1xf32> to vector<1x1x1xf32>
    tpu.vector_store %arg4[%c0_10, %c0_11, %c0_12], %21 {strides = array<i32>} : memref<1x1x1xf32, #tpu.memory_space<vmem>>, vector<1x1x1xf32>,
    return
  }
  func.func @transform_0(%arg0: i32) -> (i32, i32, i32) {
    %c0_i32 = arith.constant 0 : i32
    %c0_i32_0 = arith.constant 0 : i32
    %c0_i32_1 = arith.constant 0 : i32
    return %arg0, %c0_i32, %c0_i32_0 : i32, i32, i32
  }
  func.func @transform_1(%arg0: i32) -> (i32, i32, i32) {
    %c0_i32 = arith.constant 0 : i32
    %c0_i32_0 = arith.constant 0 : i32
    %c0_i32_1 = arith.constant 0 : i32
    return %arg0, %c0_i32, %c0_i32_0 : i32, i32, i32
  }
  func.func @transform_2(%arg0: i32) -> (i32, i32, i32) {
    %c0_i32 = arith.constant 0 : i32
    %c0_i32_0 = arith.constant 0 : i32
    %c0_i32_1 = arith.constant 0 : i32
    return %arg0, %c0_i32, %c0_i32_0 : i32, i32, i32
  }
  func.func @transform_3(%arg0: i32) -> (i32, i32, i32) {
    %c0_i32 = arith.constant 0 : i32
    %c0_i32_0 = arith.constant 0 : i32
    %c0_i32_1 = arith.constant 0 : i32
    return %arg0, %c0_i32, %c0_i32_0 : i32, i32, i32
  }
}

</mosaic_0001>

<bundles_post_ra>
// kernel: tpu_custom_call.1
= control target key start
LH: loop header
LB: loop body
LE: loop exit
PB: predicated region body
PF: predicated region fallthrough
CT: control target
= control target key end

     0   :  { %8 = vsyncpa [#allocation3], 0  ;;  %s693_s0 = inlined_call_operand.hbm [shape: f32[2,4,8], index: 0, kind: input, shape index: {}]   ;;  %s694_s1 = inlined_call_operand.hbm [shape: f32[2,4,8], index: 1, kind: input, shape index: {}]   ;;  %s695_s2 = inlined_call_operand.vmem [shape: f32[2,1,8], index: 2, kind: input, shape index: {}]   ;;  %s696_s3 = inlined_call_operand.vmem [shape: f32[2,1,1], index: 3, kind: output, shape index: {}]  }
   0x1   :  { %10 = vsyncpa [#allocation3 + $0x1], 0 }
   0x2   :  { %11 = vsyncpa [#allocation5], 0 }
   0x3   :  { %13 = vsyncpa [#allocation5 + $0x1], 0  ;;  %s536_s12 = smov 0   ;;  %s538_s13 = smov 0  }
   0x4   :  { %s540_s14 = smov 0   ;;  %s542_s15 = smov 0  }
   0x5 LB: > { %s555_s16 = sadd.s32 4294967295, %s512_s15   ;;  %s558_s17 = sadd.s32 1, %s512_s15   ;;  %s512_s15 = sphi %s542_s15, %s708_s15   ;;  %s508_s14 = sphi %s540_s14, %s707_s14   ;;  %s504_s13 = sphi %s538_s13, %s706_s13   ;;  %s500_s12 = sphi %s536_s12, %s705_s12  }
   0x6   : > { %s23_s18 = ssub.s32 %s512_s15, %s558_s17  ;;  %s26_s19 = sadd.s32 1, %s508_s14 }
   0x7   : > { %p24_p0 = scmp.eq.s32.totalorder %s23_s18, 0  ;;  %p33_p1 = scmp.ne.s32.totalorder %s508_s14, %s504_s13 }
   0x8   : > { %p34_p2 = scmp.eq.s32.totalorder %s512_s15, 0  ;;  %p39_p3 = scmp.ne.s32.totalorder %s504_s13, %s500_s12 }
   0x9   : > { %s568_s20 = scalar_select %p24_p0, %s508_s14, %s26_s19  }
   0xa   : > { %p35_p4 = por %p34_p2, %p33_p1  ;;  %p40_p5 = scmp.eq.s32.totalorder %s555_s16, 0 }
   0xb   : > { %p379_p6 = scmp.lt.s32.totalorder %s512_s15, 2  ;;  %s577_s22 = sand.u32 1, %s508_s14  }
   0xc   : > { %p572_p7 = por %p40_p5, %p39_p3  ;;  %s358_s23 = sshll.u32 %s577_s22, 2 }
   0xd   : > { %s359_s24 = sshll.u32 %s512_s15, 6  ;;  %s145_s28 = scalar_lea.vmem [#allocation2], %s358_s23 }
   0xe   : > { %s698_s21 = scalar_select %p572_p7, 1, 0 }
   0xf   : > { %s586_s27 = scalar_lea.hbm %s693_s0, %s359_s24  ;;  %s152_s29 = sshll.u32 %s145_s28, 4  ;;  %s590_s29 = int_to_ptr.vmem [resolvable:$true] %s152_s29 }
  0x10   : > { %p592_p8 = pnand %p379_p6, %p35_p4  ;;  %s142_s4 = scalar_lea.sflag [#allocation3], %s577_s22 }
  0x11   : > { %s414_s5 = scalar_lea.hbm %s586_s27, 64  ;;  %s419_s8 = scalar_lea.hbm %s693_s0, 128 }
  0x12   : > { %p415_p11 = scmp.ne.s32.totalorder %s586_s27, %s414_s5  ;;  %p416_p12 = pneg %p592_p8 }
  0x13   : > { %p420_p1 = scmp.lt.u32.totalorder %s586_s27, %s693_s0  ;;  %p421_p2 = scmp.lt.u32.totalorder %s419_s8, %s414_s5 }
  0x14   : > { %p417_p13 = pnand %p416_p12, %p415_p11  ;;  %p423_p4 = scmp.lt.u32.totalorder %s414_s5, %s586_s27 }
  0x15   : > { %p422_p3 = por %p421_p2, %p420_p1 }
  0x16   : > { %p418_p0 = pneg %p417_p13 }
  0x17   : > { %p424_p5 = por %p423_p4, %p422_p3 }
  0x19   : > { %p425_p6 = pnand %p424_p5, %p418_p0 }
  0x1b   : > { %428 = shalt.err (!%p425_p6)
}
  0x1c   : > { %s429_s11 = scalar_lea.vmem %s590_s29, 64  ;;  %s514_s12 = smov [#allocation2]  }
  0x1d   : > { %p430_p11 = scmp.ne.s32.totalorder %s590_s29, %s429_s11  ;;  %s434_s18 = sshll.u32 %s514_s12, 4  ;;  %s435_s18 = int_to_ptr.vmem [resolvable:$false] %s434_s18 }
  0x1e   : > { %s436_s19 = scalar_lea.vmem %s435_s18, 128  ;;  %p437_p10 = scmp.lt.s32.totalorder %s590_s29, %s435_s18 }
  0x1f   : > { %p432_p13 = pnand %p430_p11, %p416_p12  ;;  %p438_p1 = scmp.lt.s32.totalorder %s436_s19, %s429_s11 }
  0x21   : > { %p433_p9 = pneg %p432_p13  ;;  %p439_p2 = por %p438_p1, %p437_p10 }
  0x23   : > { %p440_p3 = pnand %p439_p2, %p433_p9 }
  0x25   : > { %443 = shalt.err (!%p440_p3)
}
  0x26   : > { %375 = dma.hbm_to_vmem [thread:$0]  (!%p592_p8), %s586_s27, 64, %s590_s29, %s142_s4  }
  0x27   : > { %p700_p0 = scmp.lt.s32.totalorder %s512_s15, 3  ;;  %p701_p4 = scmp.ge.s32.totalorder %s512_s15, 1 }
  0x28   : > { %s637_s5 = scalar_lea.hbm %s694_s1, %s359_s24  ;;  %s163_s6 = scalar_lea.vmem [#allocation4], %s358_s23 }
  0x29   : > { %p628_p5 = pnand %p701_p4, %p700_p0  ;;  %s170_s7 = sshll.u32 %s163_s6, 4  ;;  %s171_s7 = int_to_ptr.vmem [resolvable:$true] %s170_s7 }
  0x2a   : > { %s160_s27 = scalar_lea.sflag [#allocation5], %s577_s22  ;;  %s444_s29 = scalar_lea.hbm %s637_s5, 64 }
  0x2b   : > { %s702_s25 = scalar_select %p628_p5, 1, 0 }
  0x2c   : > { %p445_p9 = scmp.ne.s32.totalorder %s637_s5, %s444_s29  ;;  %s449_s24 = scalar_lea.hbm %s694_s1, 128 }
  0x2d   : > { %p450_p11 = scmp.lt.u32.totalorder %s637_s5, %s694_s1  ;;  %p451_p13 = scmp.lt.u32.totalorder %s449_s24, %s444_s29 }
  0x2e   : > { %p447_p10 = pnand %p445_p9, %p416_p12  ;;  %p453_p2 = scmp.lt.u32.totalorder %s444_s29, %s637_s5 }
  0x2f   : > { %p452_p1 = por %p451_p13, %p450_p11 }
  0x30   : > { %p448_p6 = pneg %p447_p10 }
  0x31   : > { %p454_p3 = por %p453_p2, %p452_p1 }
  0x33   : > { %p455_p0 = pnand %p454_p3, %p448_p6 }
  0x35   : > { %458 = shalt.err (!%p455_p0)
}
  0x36   : > { %s459_s22 = scalar_lea.vmem %s171_s7, 64  ;;  %s515_s23 = smov [#allocation4]  }
  0x37   : > { %p460_p4 = scmp.ne.s32.totalorder %s171_s7, %s459_s22  ;;  %s464_s10 = sshll.u32 %s515_s23, 4  ;;  %s465_s10 = int_to_ptr.vmem [resolvable:$false] %s464_s10 }
  0x38   : > { %s466_s11 = scalar_lea.vmem %s465_s10, 128  ;;  %p467_p7 = scmp.lt.s32.totalorder %s171_s7, %s465_s10 }
  0x39   : > { %p462_p9 = pnand %p460_p4, %p416_p12  ;;  %p468_p5 = scmp.lt.s32.totalorder %s466_s11, %s459_s22 }
  0x3b   : > { %p463_p10 = pneg %p462_p9  ;;  %p469_p11 = por %p468_p5, %p467_p7 }
  0x3d   : > { %p470_p13 = pnand %p469_p11, %p463_p10 }
  0x3f   : > { %473 = shalt.err (!%p470_p13)
}
  0x40   : > { %378 = dma.hbm_to_vmem [thread:$0]  (!%p592_p8), %s637_s5, 64, %s171_s7, %s160_s27  }
  0x41   : > { %p703_p6 = scmp.ne.s32.totalorder %s702_s25, 0 }
  0x42   : > { %s187_s12 = sand.u32 (!%p703_p6), 1, %s504_s13   ;;  %p704_p12 = scmp.ne.s32.totalorder (!%p703_p6), %s698_s21, 0 }
  0x43   : > { %185 = sbr.rel (%p703_p6) target bundleno = 256 (0x100), region = 32  ;;  %s363_s18 = sshll.u32 (!%p703_p6), %s187_s12, 2 }
  0x44   : > { %s188_s19 = scalar_lea.sflag (!%p703_p6), [#allocation3], %s187_s12  ;;  %s191_s26 = scalar_lea.vmem (!%p703_p6), [#allocation2], %s363_s18 }
  0x4a   : > { %491 = dma.done.wait (%p704_p12), %s188_s19, 64  }
  0x4b   : > { %493 = vsyncadd (%p704_p12), %s188_s19, 4294967232  ;;  %s197_s28 = scalar_lea.sflag [#allocation5], %s187_s12  ;;  %s200_s6 = scalar_lea.vmem [#allocation4], %s363_s18 }
  0x4c   : > { %495 = dma.done.wait (%p704_p12), %s197_s28, 64  }
  0x4d   : > { %497 = vsyncadd (%p704_p12), %s197_s28, 4294967232  ;;  %v236_v0 = vld [vmem:[%s200_s6] sm:$0xf]  ;;  %p229_p7 = scmp.lt.s32.totalorder %s555_s16, 1  ;;  %v235_v2 = vld [vmem:[%s191_s26] sm:$0xf] }
  0x4e   : > { %v238_v1 = vadd.f32 0.0001, %v236_v0  ;;  %vm250_vm0 = vcmask 60416   ;;  %vm254_vm1 = vcmask 1043456   ;;  %vm262_vm2 = vcmask 0  }
  0x4f   : > { %s710_s16 = smov (!%p229_p7, %s555_s16), 1 }
  0x50   : > { %412 = vrcp.f32 %v238_v1  ;;  %s231_s5 = scalar_lea.vmem %s695_s2, %s710_s16  ;;  %s234_s27 = scalar_lea.vmem %s696_s3, %s710_s16 }
  0x51   : > { %v365_v4 = vld [vmem:[%s231_s5] ss:$0 sm:$0xff] }
  0x5a   : > { %v413_v3 = vpop.eup %412 }
  0x5b   : > { %v240_v5 = vmul.f32 %v413_v3, %v235_v2 }
  0x5d   : > { %v247_v6 = vmul.f32 %v365_v4, %v240_v5 }
  0x5f   : > { %v248_v7 = vsub.f32 %v247_v6, %v365_v4 }
  0x61   : > { %v249_v8 = vand.u32 2147483647, %v248_v7 }
  0x63   : > { %v251_v9 = vsel %vm250_vm0, %v249_v8, 0.0 }
  0x64   : > { %252 = vadd.xlane.f32.xlu0 %v251_v9 }
  0xf1   : > { %v253_v10 = vpop.xlane.xlu0 %252 }
  0xf2   : > { %v255_v11 = vsel %vm254_vm1, %v253_v10, 0.0 }
  0xf3   : > { %v256_v12 = vrot.slane %v255_v11, 4 }
  0xf5   : > { %v257_v13 = vadd.f32 %v256_v12, %v255_v11 }
  0xf7   : > { %v258_v14 = vrot.slane %v257_v13, 2 }
  0xf9   : > { %v259_v15 = vadd.f32 %v258_v14, %v257_v13 }
  0xfb   : > { %v260_v16 = vrot.slane %v259_v15, 1 }
  0xfd   : > { %v261_v17 = vadd.f32 %v260_v16, %v259_v15 }
  0xff   : > { %263 = vst.msk [vmem:[%s234_s27] sm:$0x1] %vm262_vm2, %v261_v17 }
 0x100 PF: > { %p16_p8 = scmp.ge.s32.totalorder %s558_s17, 4   ;;  %s705_s12 = smov %s504_s13 }
 0x101   : > { %s706_s13 = smov %s508_s14  ;;  %s707_s14 = smov %s568_s20 }
 0x102   : > { %s708_s15 = smov %s558_s17  ;;  %18 = sbr.rel (!%p16_p8) target bundleno = 5 (0x5), region = 88 }
 0x109   :  { %281 = vsyncpa [#allocation3], 1 }
 0x10a   :  { %283 = vsyncpa [#allocation3 + $0x1], 1 }
 0x10b   :  { %284 = vsyncpa [#allocation5], 1 }
 0x10c   :  { %286 = vsyncpa [#allocation5 + $0x1], 1 }

</bundles_post_ra>
